<compile_context>
chip_gen: v7x
topology: tpu7x:2x2x1
jax: 0.10.0
libtpu: 0.0.40
codegen_flags: <defaults>
</compile_context>

<pallas_src>
import jax
import jax.numpy as jnp
from jax.experimental import pallas as pl
from jax.experimental.pallas import tpu as pltpu

HIDDEN_SIZE = 100    # matches the global `hidden_size = 100` used for slicing
INPUT_SIZE = 64
BATCH = 8

HP = 128             # hidden padded to a full lane tile
INP = 128            # input padded to a full lane tile
KP = INP + HP        # fused contraction dim = 256 (one MXU pass on v6e/v7x)

# Gate order inside the kernel layout: [f, i, o, g]  (sigmoid gates first,
# contiguous; tanh gate last).  Original (reference) order is [f, g, i, o].
_GATE_PERM = (0, 2, 3, 1)   # new_block_k = original_block[_GATE_PERM[k]]


def lstm_cell_kernel(xh_ref, c_ref, w_ref, b_ref, hc_ref):
    xh = xh_ref[...]                      # (B, 256)
    c = c_ref[...]                        # (B, 128) padded old cell state

    # Single fused MXU matmul with f32 accumulation, then the reference's
    # pre-gate tanh.
    A = jnp.tanh(
        jnp.dot(xh, w_ref[...], preferred_element_type=jnp.float32) + b_ref[...]
    )                                     # (B, 512), gate blocks [f, i, o, g]

    # sigmoid(x) == 0.5 * tanh(0.5 * x) + 0.5 : one EUP tanh over the
    # contiguous 384-lane [f, i, o] slice + a VPU fma.
    sig = 0.5 * jnp.tanh(0.5 * A[:, : 3 * HP]) + 0.5     # (B, 384)
    f = sig[:, 0 * HP:1 * HP]
    i = sig[:, 1 * HP:2 * HP]
    o = sig[:, 2 * HP:3 * HP]
    g = jnp.tanh(A[:, 3 * HP:4 * HP])                    # (B, 128)

    c_next = f * c + g * i
    h_next = o * jnp.tanh(c)              # uses OLD c (as in reference)

    # Packed lane-dense output slab: [h_next | c_next], both 128-aligned.
    hc_ref[:, :HP] = h_next
    hc_ref[:, HP:] = c_next


def prepare_lstm_params(wx, wh, bias, *, input_size=INPUT_SIZE, hidden=HIDDEN_SIZE):
    """One-time weight prep into the kernel-ready, lane-dense layout.

    wx: (4H, In), wh: (4H, H), bias: (4H,)  [PyTorch nn.Linear layout,
    gate row-blocks in reference order f, g, i, o].
    Returns W (KP, 4*HP) and b (1, 4*HP) with gate blocks reordered to
    [f, i, o, g], each 100-wide block zero-padded to 128 columns, and the
    contraction dim zero-padded to 256.
    """
    assert input_size <= INP and hidden <= HP
    perm = jnp.asarray(_GATE_PERM)

    def pad_gate_cols(w_t):               # w_t: (K, 4H) -> (K, 4*HP)
        k = w_t.shape[0]
        w4 = w_t.reshape(k, 4, hidden)[:, perm, :]                 # reorder gates
        w4 = jnp.pad(w4, ((0, 0), (0, 0), (0, HP - hidden)))
        return w4.reshape(k, 4 * HP)

    wx_p = pad_gate_cols(wx.T)                                     # (In, 512)
    wx_p = jnp.pad(wx_p, ((0, INP - input_size), (0, 0)))          # (128, 512)
    wh_p = pad_gate_cols(wh.T)                                     # (H, 512)
    wh_p = jnp.pad(wh_p, ((0, HP - hidden), (0, 0)))               # (128, 512)
    w = jnp.concatenate([wx_p, wh_p], axis=0)                      # (256, 512)

    b = jnp.pad(bias.reshape(4, hidden)[perm],
                ((0, 0), (0, HP - hidden))).reshape(1, 4 * HP)     # (1, 512)
    return w, b


@jax.jit
def lstm_cell(x, h, c, w, b):
    """Per-step wrapper. `w`, `b` must come from prepare_lstm_params (hoisted
    out so a sequence loop pays no per-step weight-prep cost)."""
    B = x.shape[0]
    in_dim = x.shape[-1]
    hid = h.shape[-1]

    xh = jnp.concatenate(
        [jnp.pad(x, ((0, 0), (0, INP - in_dim))),
         jnp.pad(h, ((0, 0), (0, HP - hid)))], axis=-1)            # (B, 256)
    c_p = jnp.pad(c, ((0, 0), (0, HP - hid)))                      # (B, 128)

    vmem = pl.BlockSpec(memory_space=pltpu.MemorySpace.VMEM)
    hc = pl.pallas_call(
        lstm_cell_kernel,
        out_shape=jax.ShapeDtypeStruct((B, 2 * HP), jnp.float32),
        in_specs=[vmem, vmem, vmem, vmem],
        out_specs=vmem,
    )(xh, c_p, w, b)

    # Slice padded lanes back off.
    return hc[:, :hid], hc[:, HP:HP + hid]
    # TODO(synk): for sequence workloads, fold the time loop into one
    # pallas_call (grid=(T,), weights with constant index_map, h/c carried in
    # VMEM scratch) instead of calling this per step.


def lstm_cell_ref(x, h, c, wx, wh, bias):
    """Pure-JAX reference mirroring the PyTorch forward exactly."""
    H = h.shape[-1]
    A = jnp.tanh(x @ wx.T + h @ wh.T + bias)
    f = jax.nn.sigmoid(A[:, :H])
    g = jnp.tanh(A[:, H:2 * H])
    i = jax.nn.sigmoid(A[:, 2 * H:3 * H])
    o = jax.nn.sigmoid(A[:, 3 * H:])
    c_next = f * c + g * i
    h_next = o * jnp.tanh(c)
    return h_next, c_next


if __name__ == "__main__":
    key = jax.random.PRNGKey(0)
    kx, kh, kc, kwx, kwh, kb = jax.random.split(key, 6)

    H, In, B = HIDDEN_SIZE, INPUT_SIZE, BATCH

    # Inputs.
    x = jax.random.normal(kx, (B, In), dtype=jnp.float32)
    h = jax.random.normal(kh, (B, H), dtype=jnp.float32)
    c = jax.random.normal(kc, (B, H), dtype=jnp.float32)

    # Deterministic parameter init (PyTorch-like: Linear weights uniform in
    # +/- 1/sqrt(fan_in); bias ~ N(0,1) as in the module's __init__).
    wx = jax.random.uniform(kwx, (4 * H, In), dtype=jnp.float32,
                            minval=-1.0 / jnp.sqrt(In), maxval=1.0 / jnp.sqrt(In))
    wh = jax.random.uniform(kwh, (4 * H, H), dtype=jnp.float32,
                            minval=-1.0 / jnp.sqrt(H), maxval=1.0 / jnp.sqrt(H))
    bias = jax.random.normal(kb, (4 * H,), dtype=jnp.float32)

    # One-time weight prep (hoisted out of the per-step path).
    w_prepped, b_prepped = prepare_lstm_params(wx, wh, bias)
    jax.block_until_ready((w_prepped, b_prepped))

    h_next, c_next = lstm_cell(x, h, c, w_prepped, b_prepped)
    jax.block_until_ready((h_next, c_next))

    # Sanity check against pure-JAX reference on the original (unpadded) math.
    h_ref, c_ref = lstm_cell_ref(x, h, c, wx, wh, bias)
    assert jnp.allclose(h_next, h_ref, atol=1e-5, rtol=1e-5)
    assert jnp.allclose(c_next, c_ref, atol=1e-5, rtol=1e-5)

    print("KERNEL_OK")
</pallas_src>

<mosaic_0001>
module attributes {stable_mosaic.version = 11 : i64} {
  func.func @lstm_cell_kernel(%arg0: memref<8x256xf32, #tpu.memory_space<vmem>>, %arg1: memref<8x128xf32, #tpu.memory_space<vmem>>, %arg2: memref<256x512xf32, #tpu.memory_space<vmem>>, %arg3: memref<1x512xf32, #tpu.memory_space<vmem>>, %arg4: memref<8x256xf32, #tpu.memory_space<vmem>>) attributes {dimension_semantics = [], scalar_prefetch = 0 : i64, scratch_operands = 0 : i64, tpu.core_type = #tpu.core_type<tc>} {
    %c0 = arith.constant 0 : index
    %c0_0 = arith.constant 0 : index
    %0 = vector.load %arg0[%c0, %c0_0] : memref<8x256xf32, #tpu.memory_space<vmem>>, vector<8x256xf32>
    %c0_1 = arith.constant 0 : index
    %c0_2 = arith.constant 0 : index
    %1 = vector.load %arg1[%c0_1, %c0_2] : memref<8x128xf32, #tpu.memory_space<vmem>>, vector<8x128xf32>
    %c0_3 = arith.constant 0 : index
    %c0_4 = arith.constant 0 : index
    %2 = vector.load %arg2[%c0_3, %c0_4] : memref<256x512xf32, #tpu.memory_space<vmem>>, vector<256x512xf32>
    %cst = arith.constant dense<0.000000e+00> : vector<8x512xf32>
    %3 = tpu.matmul %0, %2, %cst {dimension_numbers = #tpu.dot_dimension_numbers<[1], [0], [0], [1], [0, 0, 1, 1], [], []>} : vector<8x256xf32>, vector<256x512xf32>, vector<8x512xf32> -> vector<8x512xf32>
    %c0_5 = arith.constant 0 : index
    %c0_6 = arith.constant 0 : index
    %4 = vector.load %arg3[%c0_5, %c0_6] : memref<1x512xf32, #tpu.memory_space<vmem>>, vector<1x512xf32>
    %5 = vector.broadcast %4 : vector<1x512xf32> to vector<8x512xf32>
    %6 = arith.addf %3, %5 : vector<8x512xf32>
    %7 = math.tanh %6 : vector<8x512xf32>
    %8 = vector.extract_strided_slice %7 {offsets = [0, 0], sizes = [8, 384], strides = [1, 1]} : vector<8x512xf32> to vector<8x384xf32>
    %cst_7 = arith.constant 5.000000e-01 : f32
    %9 = vector.broadcast %cst_7 : f32 to vector<8x384xf32>
    %10 = arith.mulf %9, %8 : vector<8x384xf32>
    %11 = math.tanh %10 : vector<8x384xf32>
    %cst_8 = arith.constant 5.000000e-01 : f32
    %12 = vector.broadcast %cst_8 : f32 to vector<8x384xf32>
    %13 = arith.mulf %12, %11 : vector<8x384xf32>
    %cst_9 = arith.constant 5.000000e-01 : f32
    %14 = vector.broadcast %cst_9 : f32 to vector<8x384xf32>
    %15 = arith.addf %13, %14 : vector<8x384xf32>
    %16 = vector.extract_strided_slice %15 {offsets = [0, 0], sizes = [8, 128], strides = [1, 1]} : vector<8x384xf32> to vector<8x128xf32>
    %17 = vector.extract_strided_slice %15 {offsets = [0, 128], sizes = [8, 128], strides = [1, 1]} : vector<8x384xf32> to vector<8x128xf32>
    %18 = vector.extract_strided_slice %15 {offsets = [0, 256], sizes = [8, 128], strides = [1, 1]} : vector<8x384xf32> to vector<8x128xf32>
    %19 = vector.extract_strided_slice %7 {offsets = [0, 384], sizes = [8, 128], strides = [1, 1]} : vector<8x512xf32> to vector<8x128xf32>
    %20 = math.tanh %19 : vector<8x128xf32>
    %21 = arith.mulf %16, %1 : vector<8x128xf32>
    %22 = arith.mulf %20, %17 : vector<8x128xf32>
    %23 = arith.addf %21, %22 : vector<8x128xf32>
    %24 = math.tanh %1 : vector<8x128xf32>
    %25 = arith.mulf %18, %24 : vector<8x128xf32>
    %c0_10 = arith.constant 0 : index
    %c0_11 = arith.constant 0 : index
    %26 = vector.load %arg4[%c0_10, %c0_11] : memref<8x256xf32, #tpu.memory_space<vmem>>, vector<8x128xf32>
    tpu.vector_store %arg4[%c0_10, %c0_11], %25 {strides = array<i32>} : memref<8x256xf32, #tpu.memory_space<vmem>>, vector<8x128xf32>,
    %c0_12 = arith.constant 0 : index
    %c128 = arith.constant 128 : index
    %27 = vector.load %arg4[%c0_12, %c128] : memref<8x256xf32, #tpu.memory_space<vmem>>, vector<8x128xf32>
    tpu.vector_store %arg4[%c0_12, %c128], %23 {strides = array<i32>} : memref<8x256xf32, #tpu.memory_space<vmem>>, vector<8x128xf32>,
    return
  }
}

</mosaic_0001>

<bundles_post_ra>
// kernel: lstm_cell.1
= control target key start
LH: loop header
LB: loop body
LE: loop exit
PB: predicated region body
PF: predicated region fallthrough
CT: control target
= control target key end

     0   :  { %9 = vsyncpa [#allocation3], 0  ;;  %s528_s15 = smov [#allocation2]   ;;  %s586_s0 = inlined_call_operand.vmem [shape: f32[8,256], index: 0, kind: input, shape index: {}]   ;;  %s587_s1 = inlined_call_operand.vmem [shape: f32[8,128], index: 1, kind: input, shape index: {}]   ;;  %s588_s2 = inlined_call_operand.hbm [shape: f32[256,512], index: 2, kind: input, shape index: {}]   ;;  %s589_s3 = inlined_call_operand.vmem [shape: f32[1,512], index: 3, kind: input, shape index: {}]   ;;  %s590_s4 = inlined_call_operand.vmem [shape: f32[8,256], index: 4, kind: output, shape index: {}]  }
   0x1   :  { %s19_s16 = sshll.u32 %s528_s15, 4  ;;  %s504_s19 = scalar_lea.hbm %s588_s2, 16384  ;;  %s20_s16 = int_to_ptr.vmem [resolvable:$true] %s19_s16 }
   0x2   :  { %p505_p0 = scmp.ne.s32.totalorder %s588_s2, %s504_s19  ;;  %p508_p1 = scmp.lt.u32.totalorder %s504_s19, %s588_s2 }
   0x4   :  { %p510_p2 = pnand %p508_p1, %p505_p0 }
   0x6   :  { %513 = shalt.err (!%p510_p2)
}
   0x7   :  { %s514_s24 = scalar_lea.vmem %s20_s16, 16384  ;;  %p519_p4 = scmp.lt.s32.totalorder %s20_s16, %s20_s16 }
   0x8   :  { %p515_p3 = scmp.ne.s32.totalorder %s20_s16, %s514_s24  ;;  %p520_p5 = scmp.lt.s32.totalorder %s514_s24, %s514_s24 }
   0xa   :  { %p521_p6 = por %p520_p5, %p519_p4 }
   0xc   :  { %p522_p7 = pnand %p521_p6, %p515_p3 }
   0xe   :  { %525 = shalt.err (!%p522_p7)
}
   0xf   :  { %s529_s25 = smov 512   ;;  %s530_s26 = smov 32  }
  0x10   :  { %25 = dma.hbm_to_vmem [thread:$0]  %s588_s2, 16384, %s20_s16, [#allocation3], %s529_s25, %s529_s25, %s530_s26  }
  0x11   :  { %526 = dma.done.wait [#allocation3], 16384  }
  0x12   :  { %527 = vsyncadd [#allocation3], 4294950912  ;;  %v35_v0 = vld [vmem:[#allocation2 + $0x8] sm:$0xff]  ;;  %v34_v2 = vld [vmem:[#allocation2] sm:$0xff] }
  0x13   :  { %v39_v1 = vld [vmem:[#allocation2 + $0x28] sm:$0xff]  ;;  %v38_v4 = vld [vmem:[#allocation2 + $0x20] sm:$0xff]  ;;  %v37_v5 = vld [vmem:[#allocation2 + $0x18] sm:$0xff] }
  0x14   :  { %v355_v3 = vpack.c.bf16 %v39_v1, %v35_v0  ;;  %v41_v6 = vld [vmem:[#allocation2 + $0x38] sm:$0xff]  ;;  %v357_v7 = vpack.c.bf16 %v38_v4, %v34_v2  ;;  %v36_v9 = vld [vmem:[#allocation2 + $0x10] sm:$0xff]  ;;  %v43_v11 = vld [vmem:[#allocation2 + $0x48] sm:$0xff] }
  0x15   :  { %v419_v8 = vpack.c.bf16 %v41_v6, %v37_v5  ;;  %v40_v10 = vld [vmem:[#allocation2 + $0x30] sm:$0xff]  ;;  %v47_v13 = vld [vmem:[#allocation2 + $0x68] sm:$0xff]  ;;  %v42_v14 = vld [vmem:[#allocation2 + $0x40] sm:$0xff] }
  0x16   :  { %356 = vmatprep.subr.bf16.mxu0 %v355_v3  ;;  %v421_v12 = vpack.c.bf16 %v40_v10, %v36_v9  ;;  %v46_v15 = vld [vmem:[#allocation2 + $0x60] sm:$0xff]  ;;  %v359_v16 = vpack.c.bf16 %v47_v13, %v43_v11  ;;  %v45_v18 = vld [vmem:[#allocation2 + $0x58] sm:$0xff]  ;;  %v44_v20 = vld [vmem:[#allocation2 + $0x50] sm:$0xff] }
  0x17   :  { %358 = vmatpush1.bf16.msra.mxu0 %v357_v7  ;;  %420 = vmatprep.subr.bf16.mxu1 %v419_v8  ;;  %v361_v17 = vpack.c.bf16 %v46_v15, %v42_v14  ;;  %v49_v19 = vld [vmem:[#allocation2 + $0x78] sm:$0xff]  ;;  %v48_v22 = vld [vmem:[#allocation2 + $0x70] sm:$0xff]  ;;  %v51_v23 = vld [vmem:[#allocation2 + $0x88] sm:$0xff] }
  0x18   :  { %422 = vmatpush1.bf16.msra.mxu1 %v421_v12  ;;  %v423_v21 = vpack.c.bf16 %v49_v19, %v45_v18  ;;  %v55_v24 = vld [vmem:[#allocation2 + $0xa8] sm:$0xff]  ;;  %360 = vmatprep.subr.bf16.mxu0 %v359_v16  ;;  %v425_v25 = vpack.c.bf16 %v48_v22, %v44_v20  ;;  %v50_v27 = vld [vmem:[#allocation2 + $0x80] sm:$0xff]  ;;  %v53_v29 = vld [vmem:[#allocation2 + $0x98] sm:$0xff] }
  0x19   :  { %v363_v26 = vpack.c.bf16 %v55_v24, %v51_v23  ;;  %v54_v28 = vld [vmem:[#allocation2 + $0xa0] sm:$0xff]  ;;  %v57_v30 = vld [vmem:[#allocation2 + $0xb8] sm:$0xff]  ;;  %v52_v31 = vld [vmem:[#allocation2 + $0x90] sm:$0xff] }
  0x1a   :  { %424 = vmatprep.subr.bf16.mxu1 %v423_v21  ;;  %v56_v32 = vld [vmem:[#allocation2 + $0xb0] sm:$0xff]  ;;  %v365_v33 = vpack.c.bf16 %v54_v28, %v50_v27  ;;  %v427_v34 = vpack.c.bf16 %v57_v30, %v53_v29  ;;  %v59_v35 = vld [vmem:[#allocation2 + $0xc8] sm:$0xff]  ;;  %v58_v37 = vld [vmem:[#allocation2 + $0xc0] sm:$0xff] }
  0x1b   :  { %362 = vmatpush1.bf16.msra.mxu0 %v361_v17  ;;  %v63_v36 = vld [vmem:[#allocation2 + $0xe8] sm:$0xff]  ;;  %v429_v38 = vpack.c.bf16 %v56_v32, %v52_v31  ;;  %v62_v40 = vld [vmem:[#allocation2 + $0xe0] sm:$0xff]  ;;  %v61_v41 = vld [vmem:[#allocation2 + $0xd8] sm:$0xff] }
  0x1c   :  { %426 = vmatpush1.bf16.msra.mxu1 %v425_v25  ;;  %364 = vmatprep.subr.bf16.mxu0 %v363_v26  ;;  %v367_v39 = vpack.c.bf16 %v63_v36, %v59_v35  ;;  %v65_v42 = vld [vmem:[#allocation2 + $0xf8] sm:$0xff]  ;;  %v60_v44 = vld [vmem:[#allocation2 + $0xd0] sm:$0xff]  ;;  %v67_v46 = vld [vmem:[#allocation2 + $0x108] sm:$0xff]  ;;  %v369_v48 = vpack.c.bf16 %v62_v40, %v58_v37 }
  0x1d   :  { %428 = vmatprep.subr.bf16.mxu1 %v427_v34  ;;  %v431_v43 = vpack.c.bf16 %v65_v42, %v61_v41  ;;  %v64_v45 = vld [vmem:[#allocation2 + $0xf0] sm:$0xff]  ;;  %v71_v47 = vld [vmem:[#allocation2 + $0x128] sm:$0xff]  ;;  %v69_v49 = vld [vmem:[#allocation2 + $0x118] sm:$0xff] }
  0x1e   :  { %v73_v50 = vld [vmem:[#allocation2 + $0x138] sm:$0xff]  ;;  %v433_v51 = vpack.c.bf16 %v64_v45, %v60_v44  ;;  %v371_v52 = vpack.c.bf16 %v71_v47, %v67_v46  ;;  %v66_v53 = vld [vmem:[#allocation2 + $0x100] sm:$0xff]  ;;  %v68_v55 = vld [vmem:[#allocation2 + $0x110] sm:$0xff] }
  0x1f   :  { %366 = vmatpush1.bf16.msra.mxu0 %v365_v33  ;;  %v70_v54 = vld [vmem:[#allocation2 + $0x120] sm:$0xff]  ;;  %v435_v56 = vpack.c.bf16 %v73_v50, %v69_v49  ;;  %v72_v57 = vld [vmem:[#allocation2 + $0x130] sm:$0xff]  ;;  %v75_v58 = vld [vmem:[#allocation2 + $0x148] sm:$0xff] }
  0x20   :  { %430 = vmatpush1.bf16.msra.mxu1 %v429_v38  ;;  %368 = vmatprep.subr.bf16.mxu0 %v367_v39  ;;  %v79_v59 = vld [vmem:[#allocation2 + $0x168] sm:$0xff]  ;;  %v77_v60 = vld [vmem:[#allocation2 + $0x158] sm:$0xff]  ;;  %v373_v62 = vpack.c.bf16 %v70_v54, %v66_v53  ;;  %v437_v63 = vpack.c.bf16 %v72_v57, %v68_v55  ;;  %v74_v1 = vld [vmem:[#allocation2 + $0x140] sm:$0xff] }
  0x21   :  { %432 = vmatprep.subr.bf16.mxu1 %v431_v43  ;;  %v81_v61 = vld [vmem:[#allocation2 + $0x178] sm:$0xff]  ;;  %v375_v0 = vpack.c.bf16 %v79_v59, %v75_v58  ;;  %v78_v2 = vld [vmem:[#allocation2 + $0x160] sm:$0xff]  ;;  %v76_v3 = vld [vmem:[#allocation2 + $0x150] sm:$0xff] }
  0x22   :  { %v439_v4 = vpack.c.bf16 %v81_v61, %v77_v60  ;;  %v80_v5 = vld [vmem:[#allocation2 + $0x170] sm:$0xff]  ;;  %v83_v6 = vld [vmem:[#allocation2 + $0x188] sm:$0xff]  ;;  %v85_v8 = vld [vmem:[#allocation2 + $0x198] sm:$0xff]  ;;  %v377_v10 = vpack.c.bf16 %v78_v2, %v74_v1 }
  0x23   :  { %370 = vmatpush1.bf16.msra.mxu0 %v369_v48  ;;  %v87_v7 = vld [vmem:[#allocation2 + $0x1a8] sm:$0xff]  ;;  %v89_v9 = vld [vmem:[#allocation2 + $0x1b8] sm:$0xff]  ;;  %v441_v11 = vpack.c.bf16 %v80_v5, %v76_v3  ;;  %v82_v13 = vld [vmem:[#allocation2 + $0x180] sm:$0xff] }
  0x24   :  { %434 = vmatpush1.bf16.msra.mxu1 %v433_v51  ;;  %372 = vmatprep.subr.bf16.mxu0 %v371_v52  ;;  %v379_v12 = vpack.c.bf16 %v87_v7, %v83_v6  ;;  %v86_v14 = vld [vmem:[#allocation2 + $0x1a0] sm:$0xff]  ;;  %v84_v15 = vld [vmem:[#allocation2 + $0x190] sm:$0xff]  ;;  %v443_v16 = vpack.c.bf16 %v89_v9, %v85_v8  ;;  %v91_v18 = vld [vmem:[#allocation2 + $0x1c8] sm:$0xff] }
  0x25   :  { %436 = vmatprep.subr.bf16.mxu1 %v435_v56  ;;  %v88_v17 = vld [vmem:[#allocation2 + $0x1b0] sm:$0xff]  ;;  %v95_v19 = vld [vmem:[#allocation2 + $0x1e8] sm:$0xff]  ;;  %v93_v20 = vld [vmem:[#allocation2 + $0x1d8] sm:$0xff]  ;;  %v381_v22 = vpack.c.bf16 %v86_v14, %v82_v13 }
  0x26   :  { %v97_v21 = vld [vmem:[#allocation2 + $0x1f8] sm:$0xff]  ;;  %v445_v23 = vpack.c.bf16 %v88_v17, %v84_v15  ;;  %v383_v24 = vpack.c.bf16 %v95_v19, %v91_v18  ;;  %v90_v25 = vld [vmem:[#allocation2 + $0x1c0] sm:$0xff]  ;;  %v92_v27 = vld [vmem:[#allocation2 + $0x1d0] sm:$0xff] }
  0x27   :  { %374 = vmatpush1.bf16.msra.mxu0 %v373_v62  ;;  %v94_v26 = vld [vmem:[#allocation2 + $0x1e0] sm:$0xff]  ;;  %v447_v28 = vpack.c.bf16 %v97_v21, %v93_v20  ;;  %v96_v29 = vld [vmem:[#allocation2 + $0x1f0] sm:$0xff]  ;;  %v99_v30 = vld [vmem:[#allocation2 + $0x208] sm:$0xff] }
  0x28   :  { %438 = vmatpush1.bf16.msra.mxu1 %v437_v63  ;;  %376 = vmatprep.subr.bf16.mxu0 %v375_v0  ;;  %v103_v31 = vld [vmem:[#allocation2 + $0x228] sm:$0xff]  ;;  %v101_v32 = vld [vmem:[#allocation2 + $0x218] sm:$0xff]  ;;  %v385_v34 = vpack.c.bf16 %v94_v26, %v90_v25  ;;  %v449_v35 = vpack.c.bf16 %v96_v29, %v92_v27  ;;  %v98_v37 = vld [vmem:[#allocation2 + $0x200] sm:$0xff] }
  0x29   :  { %440 = vmatprep.subr.bf16.mxu1 %v439_v4  ;;  %v105_v33 = vld [vmem:[#allocation2 + $0x238] sm:$0xff]  ;;  %v387_v36 = vpack.c.bf16 %v103_v31, %v99_v30  ;;  %v102_v38 = vld [vmem:[#allocation2 + $0x220] sm:$0xff]  ;;  %v100_v39 = vld [vmem:[#allocation2 + $0x210] sm:$0xff] }
  0x2a   :  { %v451_v40 = vpack.c.bf16 %v105_v33, %v101_v32  ;;  %v104_v41 = vld [vmem:[#allocation2 + $0x230] sm:$0xff]  ;;  %v107_v42 = vld [vmem:[#allocation2 + $0x248] sm:$0xff]  ;;  %v109_v44 = vld [vmem:[#allocation2 + $0x258] sm:$0xff]  ;;  %v389_v46 = vpack.c.bf16 %v102_v38, %v98_v37 }
  0x2b   :  { %378 = vmatpush1.bf16.msra.mxu0 %v377_v10  ;;  %v111_v43 = vld [vmem:[#allocation2 + $0x268] sm:$0xff]  ;;  %v113_v45 = vld [vmem:[#allocation2 + $0x278] sm:$0xff]  ;;  %v453_v47 = vpack.c.bf16 %v104_v41, %v100_v39  ;;  %v106_v49 = vld [vmem:[#allocation2 + $0x240] sm:$0xff] }
  0x2c   :  { %442 = vmatpush1.bf16.msra.mxu1 %v441_v11  ;;  %380 = vmatprep.subr.bf16.mxu0 %v379_v12  ;;  %v391_v48 = vpack.c.bf16 %v111_v43, %v107_v42  ;;  %v110_v50 = vld [vmem:[#allocation2 + $0x260] sm:$0xff]  ;;  %v108_v51 = vld [vmem:[#allocation2 + $0x250] sm:$0xff]  ;;  %v455_v52 = vpack.c.bf16 %v113_v45, %v109_v44  ;;  %v115_v54 = vld [vmem:[#allocation2 + $0x288] sm:$0xff] }
  0x2d   :  { %444 = vmatprep.subr.bf16.mxu1 %v443_v16  ;;  %v112_v53 = vld [vmem:[#allocation2 + $0x270] sm:$0xff]  ;;  %v119_v55 = vld [vmem:[#allocation2 + $0x2a8] sm:$0xff]  ;;  %v117_v56 = vld [vmem:[#allocation2 + $0x298] sm:$0xff]  ;;  %v393_v58 = vpack.c.bf16 %v110_v50, %v106_v49 }
  0x2e   :  { %v121_v57 = vld [vmem:[#allocation2 + $0x2b8] sm:$0xff]  ;;  %v457_v59 = vpack.c.bf16 %v112_v53, %v108_v51  ;;  %v395_v60 = vpack.c.bf16 %v119_v55, %v115_v54  ;;  %v114_v61 = vld [vmem:[#allocation2 + $0x280] sm:$0xff]  ;;  %v116_v63 = vld [vmem:[#allocation2 + $0x290] sm:$0xff] }
  0x2f   :  { %382 = vmatpush1.bf16.msra.mxu0 %v381_v22  ;;  %v118_v62 = vld [vmem:[#allocation2 + $0x2a0] sm:$0xff]  ;;  %v459_v0 = vpack.c.bf16 %v121_v57, %v117_v56  ;;  %v120_v1 = vld [vmem:[#allocation2 + $0x2b0] sm:$0xff]  ;;  %v123_v2 = vld [vmem:[#allocation2 + $0x2c8] sm:$0xff] }
  0x30   :  { %446 = vmatpush1.bf16.msra.mxu1 %v445_v23  ;;  %384 = vmatprep.subr.bf16.mxu0 %v383_v24  ;;  %v127_v3 = vld [vmem:[#allocation2 + $0x2e8] sm:$0xff]  ;;  %v125_v4 = vld [vmem:[#allocation2 + $0x2d8] sm:$0xff]  ;;  %v397_v6 = vpack.c.bf16 %v118_v62, %v114_v61  ;;  %v122_v7 = vld [vmem:[#allocation2 + $0x2c0] sm:$0xff]  ;;  %v461_v8 = vpack.c.bf16 %v120_v1, %v116_v63 }
  0x31   :  { %448 = vmatprep.subr.bf16.mxu1 %v447_v28  ;;  %v129_v5 = vld [vmem:[#allocation2 + $0x2f8] sm:$0xff]  ;;  %v399_v9 = vpack.c.bf16 %v127_v3, %v123_v2  ;;  %v126_v10 = vld [vmem:[#allocation2 + $0x2e0] sm:$0xff]  ;;  %v124_v11 = vld [vmem:[#allocation2 + $0x2d0] sm:$0xff]  ;;  %v164_v2 = vlaneseq }
  0x32   :  { %v128_v12 = vld [vmem:[#allocation2 + $0x2f0] sm:$0xff]  ;;  %v463_v13 = vpack.c.bf16 %v129_v5, %v125_v4  ;;  %v131_v14 = vld [vmem:[#allocation2 + $0x308] sm:$0xff]  ;;  %v133_v17 = vld [vmem:[#allocation2 + $0x318] sm:$0xff]  ;;  %v401_v19 = vpack.c.bf16 %v126_v10, %v122_v7 }
  0x33   :  { %386 = vmatpush1.bf16.msra.mxu0 %v385_v34  ;;  %v135_v15 = vld [vmem:[#allocation2 + $0x328] sm:$0xff]  ;;  %v137_v18 = vld [vmem:[#allocation2 + $0x338] sm:$0xff]  ;;  %v465_v20 = vpack.c.bf16 %v128_v12, %v124_v11  ;;  %v130_v22 = vld [vmem:[#allocation2 + $0x300] sm:$0xff]  ;;  %v165_v3 = vshrl.u32 %v164_v2, 7 }
  0x34   :  { %450 = vmatpush1.bf16.msra.mxu1 %v449_v35  ;;  %388 = vmatprep.subr.bf16.mxu0 %v387_v36  ;;  %v32_v16 = vld [vmem:[%s586_s0 + $0x8] sm:$0xff]  ;;  %v403_v21 = vpack.c.bf16 %v135_v15, %v131_v14  ;;  %v134_v23 = vld [vmem:[#allocation2 + $0x320] sm:$0xff]  ;;  %v132_v24 = vld [vmem:[#allocation2 + $0x310] sm:$0xff]  ;;  %v467_v25 = vpack.c.bf16 %v137_v18, %v133_v17 }
  0x35   :  { %452 = vmatprep.subr.bf16.mxu1 %v451_v40  ;;  %248 = vmatprep.mubr.f32.mxu0 %v32_v16  ;;  %v136_v26 = vld [vmem:[#allocation2 + $0x330] sm:$0xff]  ;;  %v139_v27 = vld [vmem:[#allocation2 + $0x348] sm:$0xff]  ;;  %v141_v29 = vld [vmem:[#allocation2 + $0x358] sm:$0xff]  ;;  %v405_v31 = vpack.c.bf16 %v134_v23, %v130_v22  ;;  %v166_v4 = vsub.s32 0, %v165_v3  ;;  %v174_v7 = vsub.s32 2, %v165_v3 }
  0x36   :  { %319 = vmatprep.mubr.f32.mxu1 %v32_v16  ;;  %v143_v28 = vld [vmem:[#allocation2 + $0x368] sm:$0xff]  ;;  %v145_v30 = vld [vmem:[#allocation2 + $0x378] sm:$0xff]  ;;  %v469_v32 = vpack.c.bf16 %v136_v26, %v132_v24  ;;  %v138_v34 = vld [vmem:[#allocation2 + $0x340] sm:$0xff] }
  0x37   :  { %390 = vmatpush1.bf16.msra.mxu0 %v389_v46  ;;  %v407_v33 = vpack.c.bf16 %v143_v28, %v139_v27  ;;  %v142_v35 = vld [vmem:[#allocation2 + $0x360] sm:$0xff]  ;;  %v140_v36 = vld [vmem:[#allocation2 + $0x350] sm:$0xff]  ;;  %v471_v37 = vpack.c.bf16 %v145_v30, %v141_v29  ;;  %v147_v39 = vld [vmem:[#allocation2 + $0x388] sm:$0xff] }
  0x38   :  { %454 = vmatpush1.bf16.msra.mxu1 %v453_v47  ;;  %392 = vmatprep.subr.bf16.mxu0 %v391_v48  ;;  %v144_v38 = vld [vmem:[#allocation2 + $0x370] sm:$0xff]  ;;  %v151_v40 = vld [vmem:[#allocation2 + $0x3a8] sm:$0xff]  ;;  %v149_v41 = vld [vmem:[#allocation2 + $0x398] sm:$0xff]  ;;  %v409_v43 = vpack.c.bf16 %v142_v35, %v138_v34 }
  0x39   :  { %456 = vmatprep.subr.bf16.mxu1 %v455_v52  ;;  %v153_v42 = vld [vmem:[#allocation2 + $0x3b8] sm:$0xff]  ;;  %v473_v44 = vpack.c.bf16 %v144_v38, %v140_v36  ;;  %v411_v45 = vpack.c.bf16 %v151_v40, %v147_v39  ;;  %v146_v46 = vld [vmem:[#allocation2 + $0x380] sm:$0xff]  ;;  %v148_v48 = vld [vmem:[#allocation2 + $0x390] sm:$0xff] }
  0x3a   :  { %v150_v47 = vld [vmem:[#allocation2 + $0x3a0] sm:$0xff]  ;;  %v475_v49 = vpack.c.bf16 %v153_v42, %v149_v41  ;;  %v152_v50 = vld [vmem:[#allocation2 + $0x3b0] sm:$0xff]  ;;  %v155_v51 = vld [vmem:[#allocation2 + $0x3c8] sm:$0xff] }
  0x3b   :  { %394 = vmatpush1.bf16.msra.mxu0 %v393_v58  ;;  %v159_v52 = vld [vmem:[#allocation2 + $0x3e8] sm:$0xff]  ;;  %v157_v53 = vld [vmem:[#allocation2 + $0x3d8] sm:$0xff]  ;;  %v413_v55 = vpack.c.bf16 %v150_v47, %v146_v46  ;;  %v477_v56 = vpack.c.bf16 %v152_v50, %v148_v48  ;;  %v154_v58 = vld [vmem:[#allocation2 + $0x3c0] sm:$0xff] }
  0x3c   :  { %458 = vmatpush1.bf16.msra.mxu1 %v457_v59  ;;  %396 = vmatprep.subr.bf16.mxu0 %v395_v60  ;;  %v161_v54 = vld [vmem:[#allocation2 + $0x3f8] sm:$0xff]  ;;  %v415_v57 = vpack.c.bf16 %v159_v52, %v155_v51  ;;  %v158_v59 = vld [vmem:[#allocation2 + $0x3e0] sm:$0xff]  ;;  %v156_v61 = vld [vmem:[#allocation2 + $0x3d0] sm:$0xff] }
  0x3d   :  { %460 = vmatprep.subr.bf16.mxu1 %v459_v0  ;;  %v479_v60 = vpack.c.bf16 %v161_v54, %v157_v53  ;;  %v160_v62 = vld [vmem:[#allocation2 + $0x3f0] sm:$0xff]  ;;  %v417_v63 = vpack.c.bf16 %v158_v59, %v154_v58  ;;  %v31_v1 = vld [vmem:[%s586_s0] sm:$0xff] }
  0x3e   :  { %v481_v0 = vpack.c.bf16 %v160_v62, %v156_v61  ;;  %v162_v5 = vld [vmem:[%s589_s3] sm:$0xf] }
  0x3f   :  { %398 = vmatpush1.bf16.msra.mxu0 %v397_v6  ;;  %v170_v6 = vsub.s32 1, %v165_v3  ;;  %v175_v11 = vrot.slane %v162_v5, %v174_v7  ;;  %v33_v27 = vld [vmem:[%s587_s1] sm:$0xff] }
  0x40   :  { %462 = vmatpush1.bf16.msra.mxu1 %v461_v8  ;;  %400 = vmatprep.subr.bf16.mxu0 %v399_v9  ;;  %v178_v8 = vsub.s32 3, %v165_v3  ;;  %v167_v9 = vrot.slane %v162_v5, %v166_v4 }
  0x41   :  { %464 = vmatprep.subr.bf16.mxu1 %v463_v13  ;;  %v171_v10 = vrot.slane %v162_v5, %v170_v6 }
  0x42   :  { %v179_v13 = vrot.slane %v162_v5, %v178_v8 }
  0x43   :  { %402 = vmatpush1.bf16.msra.mxu0 %v401_v19 }
  0x44   :  { %466 = vmatpush1.bf16.msra.mxu1 %v465_v20  ;;  %404 = vmatprep.subr.bf16.mxu0 %v403_v21 }
  0x45   :  { %468 = vmatprep.subr.bf16.mxu1 %v467_v25 }
  0x47   :  { %406 = vmatpush1.bf16.msra.mxu0 %v405_v31 }
  0x48   :  { %470 = vmatpush1.bf16.msra.mxu1 %v469_v32  ;;  %408 = vmatprep.subr.bf16.mxu0 %v407_v33 }
  0x49   :  { %472 = vmatprep.subr.bf16.mxu1 %v471_v37 }
  0x4b   :  { %410 = vmatpush1.bf16.msra.mxu0 %v409_v43 }
  0x4c   :  { %474 = vmatpush1.bf16.msra.mxu1 %v473_v44  ;;  %412 = vmatprep.subr.bf16.mxu0 %v411_v45 }
  0x4d   :  { %476 = vmatprep.subr.bf16.mxu1 %v475_v49 }
  0x4f   :  { %414 = vmatpush1.bf16.msra.mxu0 %v413_v55 }
  0x50   :  { %478 = vmatpush1.bf16.msra.mxu1 %v477_v56  ;;  %416 = vmatprep.subr.bf16.mxu0 %v415_v57 }
  0x51   :  { %480 = vmatprep.subr.bf16.mxu1 %v479_v60 }
  0x53   :  { %418 = vmatpush1.bf16.msra.mxu0 %v417_v63 }
  0x54   :  { %482 = vmatpush1.bf16.msra.mxu1 %v481_v0 }
  0x56   :  { %249 = vmatmul.mubr.f32.vlgmr.msra.gmra.mrb[0].mxu0 %v31_v1 }
  0x57   :  { %320 = vmatmul.mubr.f32.vlgmr.msra.gmra.mrb[0].mxu1 %v31_v1 }
 0x129   :  { %v250_v12 = vpop.f32.mrb[0].mxu0 }
 0x12a   :  { %v251_v14 = vadd.f32 %v250_v12, %v167_v9  ;;  %v252_v15 = vpop.f32.mrb[1].mxu0  ;;  %v321_v16 = vpop.f32.mrb[0].mxu1 }
 0x12b   :  { %v253_v17 = vadd.f32 %v252_v15, %v171_v10  ;;  %v322_v18 = vadd.f32 %v321_v16, %v175_v11  ;;  %v323_v19 = vpop.f32.mrb[1].mxu1 }
 0x12c   :  { %486 = vtanh.f32 %v251_v14  ;;  %v324_v20 = vadd.f32 %v323_v19, %v179_v13 }
 0x12d   :  { %488 = vtanh.f32 %v253_v17 }
 0x12e   :  { %490 = vtanh.f32 %v322_v18 }
 0x12f   :  { %492 = vtanh.f32 %v324_v20 }
 0x136   :  { %v487_v21 = vpop.eup %486 }
 0x137   :  { %v489_v22 = vpop.eup %488  ;;  %v330_v23 = vmul.f32 0.5, %v487_v21 }
 0x138   :  { %v491_v24 = vpop.eup %490  ;;  %v331_v25 = vmul.f32 0.5, %v489_v22 }
 0x139   :  { %494 = vtanh.f32 %v330_v23  ;;  %v332_v26 = vmul.f32 0.5, %v491_v24  ;;  %v493_v28 = vpop.eup %492 }
 0x13a   :  { %496 = vtanh.f32 %v331_v25 }
 0x13b   :  { %498 = vtanh.f32 %v332_v26 }
 0x13c   :  { %500 = vtanh.f32 %v33_v27 }
 0x13d   :  { %502 = vtanh.f32 %v493_v28 }
 0x143   :  { %v495_v29 = vpop.eup %494 }
 0x144   :  { %v497_v30 = vpop.eup %496  ;;  %v336_v31 = vmul.f32 0.5, %v495_v29 }
 0x145   :  { %v499_v32 = vpop.eup %498  ;;  %v337_v33 = vmul.f32 0.5, %v497_v30 }
 0x146   :  { %v339_v34 = vadd.f32 0.5, %v336_v31  ;;  %v338_v35 = vmul.f32 0.5, %v499_v32  ;;  %v501_v36 = vpop.eup %500 }
 0x147   :  { %v340_v37 = vadd.f32 0.5, %v337_v33  ;;  %v503_v38 = vpop.eup %502 }
 0x148   :  { %v343_v39 = vmul.f32 %v339_v34, %v33_v27  ;;  %v341_v40 = vadd.f32 0.5, %v338_v35 }
 0x149   :  { %v344_v41 = vmul.f32 %v503_v38, %v340_v37 }
 0x14a   :  { %v347_v42 = vmul.f32 %v501_v36, %v341_v40 }
 0x14b   :  { %v345_v43 = vadd.f32 %v344_v41, %v343_v39 }
 0x14c   :  { %348 = vst [vmem:[%s590_s4] sm:$0xff] %v347_v42 }
 0x14d   :  { %349 = vst [vmem:[%s590_s4 + $0x8] sm:$0xff] %v345_v43 }
 0x14e   :  { %354 = vsyncpa [#allocation3], 1 }

</bundles_post_ra>
